<compile_context>
chip_gen: v5e
topology: v5e:2x2
jax: 0.10.0
libtpu: 0.0.40
codegen_flags: <defaults>
</compile_context>

<pallas_src>
import functools
import math

import jax
import jax.numpy as jnp
from jax.experimental import pallas as pl
from jax.experimental.pallas import tpu as pltpu


# ----------------------------------------------------------------------------
# helpers shared by kernels and the pure-JAX reference (all f32 pointwise math)
# ----------------------------------------------------------------------------
def _layernorm(x, gamma, beta, eps=1e-5):
    mu = jnp.mean(x, axis=-1, keepdims=True)
    var = jnp.mean((x - mu) ** 2, axis=-1, keepdims=True)
    return (x - mu) * jax.lax.rsqrt(var + eps) * gamma + beta


def _gelu_exact(x):
    # torch nn.GELU() default = exact erf-based GELU
    return 0.5 * x * (1.0 + jax.lax.erf(x * (1.0 / math.sqrt(2.0))))


# ----------------------------------------------------------------------------
# optional single-buffering (pl.Buffered(1)) for constant weight/bias blocks
# ----------------------------------------------------------------------------
def _probe_copy_kernel(x_ref, o_ref):
    o_ref[...] = x_ref[...]


@functools.lru_cache(maxsize=None)
def _single_buffer_mode():
    """Single-buffering constant blocks halves their VMEM footprint.  Probe once and
    fall back to default double-buffering if this JAX/libtpu rejects pipeline_mode."""
    try:
        mode = pl.Buffered(1)
        out = pl.pallas_call(
            _probe_copy_kernel,
            grid=(1,),
            in_specs=[pl.BlockSpec((8, 128), lambda i: (0, 0), pipeline_mode=mode)],
            out_specs=pl.BlockSpec((8, 128), lambda i: (0, 0)),
            out_shape=jax.ShapeDtypeStruct((8, 128), jnp.float32),
        )(jnp.zeros((8, 128), jnp.float32))
        jax.block_until_ready(out)
        return mode
    except Exception:
        return None


def _const_spec(shape):
    """BlockSpec for a block that is identical at every grid step (weights, biases)."""
    index_map = lambda *_: (0,) * len(shape)
    mode = _single_buffer_mode()
    if mode is not None:
        return pl.BlockSpec(shape, index_map, pipeline_mode=mode)
    return pl.BlockSpec(shape, index_map)


def _vmem_limit_bytes():
    """Explicit scoped-VMEM budget, re-derived per generation (v7x has only 64 MiB)."""
    try:
        cap = pltpu.get_tpu_info().vmem_capacity_bytes
    except Exception:
        cap = 64 * 1024 * 1024
    return int(cap * 3 // 4)


# ----------------------------------------------------------------------------
# kernel 1: fused QKV projection (one wide bf16 MXU matmul) + per-tile head split
#   grid = (B, S // Tq)
# ----------------------------------------------------------------------------
def qkv_proj_kernel(x_ref, wqkv_ref, bqkv_ref, q_ref, k_ref, v_ref):
    n_heads, d_k = q_ref.shape[1], q_ref.shape[3]
    x = x_ref[0].astype(jnp.bfloat16)                                   # (Tq, D)
    qkv = jnp.dot(x, wqkv_ref[...],
                  preferred_element_type=jnp.float32) + bqkv_ref[...]   # (Tq, 3D) f32
    tq = qkv.shape[0]
    # per-tile head split (1/sqrt(d_k) already folded into WQ/bQ in the wrapper)
    heads = jnp.transpose(qkv.reshape(tq, 3 * n_heads, d_k), (1, 0, 2))  # (3H, Tq, d_k)
    heads = heads.astype(jnp.bfloat16)
    q_ref[0] = heads[:n_heads]
    k_ref[0] = heads[n_heads:2 * n_heads]
    v_ref[0] = heads[2 * n_heads:]


def _attn_epilogue(ctx, x, wfc, bfc, gamma, beta):
    """Merge heads, output-project (bf16 MXU), residual add + LayerNorm1 (f32)."""
    h, tq, d_k = ctx.shape
    ctx2 = jnp.transpose(ctx, (1, 0, 2)).reshape(tq, h * d_k)            # (Tq, D)
    attn_out = jnp.dot(ctx2.astype(jnp.bfloat16), wfc,
                       preferred_element_type=jnp.float32) + bfc
    # TODO(synk): attn_pdrop / dropout1 are identity (inference mode), not RNG-masked.
    return _layernorm(attn_out + x, gamma, beta)


# ----------------------------------------------------------------------------
# kernel 2a: flash attention (online softmax over KV tiles) + out-proj + LN1
#   grid = (B, S // Tq, S // Tk); live scores never exceed (H, Tq, Tk)
# ----------------------------------------------------------------------------
def flash_attn_ln1_kernel(q_ref, k_ref, v_ref, mask_ref, x_ref,
                          wfc_ref, bfc_ref, g1_ref, be1_ref,
                          y1_ref, m_sc, l_sc, acc_sc):
    ki = pl.program_id(2)

    @pl.when(ki == 0)
    def _():
        m_sc[...] = jnp.full(m_sc.shape, -jnp.inf, jnp.float32)
        l_sc[...] = jnp.zeros(l_sc.shape, jnp.float32)
        acc_sc[...] = jnp.zeros(acc_sc.shape, jnp.float32)

    q = q_ref[0]                                              # (H, Tq, d_k) bf16
    k = k_ref[0]                                              # (H, Tk, d_k) bf16
    v = v_ref[0]                                              # (H, Tk, d_k) bf16
    mask = mask_ref[0]                                        # (Tq, Tk) int8

    s = jnp.einsum('hqd,hkd->hqk', q, k,
                   preferred_element_type=jnp.float32)        # f32 scores
    s = jnp.where(mask[None, :, :] != 0, jnp.float32(-1e9), s)

    m_prev = m_sc[...]
    m_new = jnp.maximum(m_prev, jnp.max(s, axis=-1, keepdims=True))
    alpha = jnp.exp(m_prev - m_new)
    p = jnp.exp(s - m_new)                                    # (H, Tq, Tk) f32
    l_sc[...] = alpha * l_sc[...] + jnp.sum(p, axis=-1, keepdims=True)
    acc_sc[...] = alpha * acc_sc[...] + jnp.einsum(
        'hqk,hkd->hqd', p.astype(v.dtype), v, preferred_element_type=jnp.float32)
    m_sc[...] = m_new

    @pl.when(ki == pl.num_programs(2) - 1)
    def _():
        # normalization deferred to the (H,Tq,d_k) context, not the (H,Tq,Tk) probs
        ctx = acc_sc[...] * pl.reciprocal(l_sc[...], approx=True)   # EUP slot
        y1_ref[0] = _attn_epilogue(ctx, x_ref[0], wfc_ref[...], bfc_ref[...],
                                   g1_ref[...], be1_ref[...])


# ----------------------------------------------------------------------------
# kernel 2b: attention variant that also returns the attention weights.
#   grid = (B, S // Tq); only (H, Tq, S) scores are live; weights written in bf16
#   using an exact reciprocal (they are consumed downstream).
# ----------------------------------------------------------------------------
def attn_weights_ln1_kernel(q_ref, k_ref, v_ref, mask_ref, x_ref,
                            wfc_ref, bfc_ref, g1_ref, be1_ref,
                            y1_ref, attw_ref):
    q = q_ref[0]                                              # (H, Tq, d_k) bf16
    k = k_ref[0]                                              # (H, S,  d_k) bf16
    v = v_ref[0]                                              # (H, S,  d_k) bf16
    mask = mask_ref[0]                                        # (Tq, S) int8

    s = jnp.einsum('hqd,hkd->hqk', q, k, preferred_element_type=jnp.float32)
    s = jnp.where(mask[None, :, :] != 0, jnp.float32(-1e9), s)
    m = jnp.max(s, axis=-1, keepdims=True)
    p = jnp.exp(s - m)
    w = p / jnp.sum(p, axis=-1, keepdims=True)                # exact softmax, f32
    attw_ref[0] = w.astype(attw_ref.dtype)                    # bf16 HBM writeback

    ctx = jnp.einsum('hqk,hkd->hqd', w.astype(v.dtype), v,
                     preferred_element_type=jnp.float32)
    y1_ref[0] = _attn_epilogue(ctx, x_ref[0], wfc_ref[...], bfc_ref[...],
                               g1_ref[...], be1_ref[...])


# ----------------------------------------------------------------------------
# kernel 3: position-wise FFN tiled over d_ff (K-reduction) + residual + LN2
#   grid = (B, S // Tq, d_ff // Tff)
# ----------------------------------------------------------------------------
def ffn_ln2_kernel(y1_ref, w1_ref, b1_ref, w2_ref, b2_ref, g2_ref, be2_ref,
                   y2_ref, acc_ref):
    fi = pl.program_id(2)

    @pl.when(fi == 0)
    def _():
        acc_ref[...] = jnp.zeros(acc_ref.shape, jnp.float32)

    y1 = y1_ref[0]                                            # (Tq, D) f32
    h = jnp.dot(y1.astype(jnp.bfloat16), w1_ref[...],
                preferred_element_type=jnp.float32) + b1_ref[...]
    h = _gelu_exact(h)                                        # f32 erf-GELU
    acc_ref[...] += jnp.dot(h.astype(jnp.bfloat16), w2_ref[...],
                            preferred_element_type=jnp.float32)

    @pl.when(fi == pl.num_programs(2) - 1)
    def _():
        f = acc_ref[...] + b2_ref[...]
        # TODO(synk): dropout2 is identity (inference mode), not RNG-masked.
        y2_ref[0] = _layernorm(f + y1, g2_ref[...], be2_ref[...])


# ----------------------------------------------------------------------------
# wrapper
# ----------------------------------------------------------------------------
def decode_layer(x, attn_mask, params, n_heads, *, return_attn_weights=True,
                 mask_is_shared=True, q_tile=128, kv_tile=128, ff_tile=512):
    """DecodeLayer forward. Returns (output, attn_weights-or-None)."""
    B, S, D = x.shape
    d_ff = params["w1"].shape[1]
    assert D % n_heads == 0
    d_k = D // n_heads
    tq = min(q_tile, S)
    tk = min(kv_tile, S)
    tf = min(ff_tile, d_ff)
    assert S % tq == 0 and S % tk == 0 and d_ff % tf == 0

    # bf16 matmul operands (weights cast once); biases / LN params stay f32.
    scale = 1.0 / math.sqrt(d_k)
    wqkv = jnp.concatenate(
        [params["wq"] * scale, params["wk"], params["wv"]], axis=1).astype(jnp.bfloat16)
    bqkv = jnp.concatenate([params["bq"] * scale, params["bk"], params["bv"]], axis=1)
    wfc = params["wfc"].astype(jnp.bfloat16)
    w1 = params["w1"].astype(jnp.bfloat16)
    w2 = params["w2"].astype(jnp.bfloat16)
    mask_i8 = attn_mask.astype(jnp.int8)                      # 1 byte/elem HBM read

    vmem_limit = _vmem_limit_bytes()

    # ---- 1) fused QKV projection; head-major (B, H, S, d_k) bf16 outputs ----
    head_out_spec = pl.BlockSpec((1, n_heads, tq, d_k), lambda b, si: (b, 0, si, 0))
    q, k, v = pl.pallas_call(
        qkv_proj_kernel,
        grid=(B, S // tq),
        in_specs=[
            pl.BlockSpec((1, tq, D), lambda b, si: (b, si, 0)),
            _const_spec((D, 3 * D)),
            _const_spec((1, 3 * D)),
        ],
        out_specs=[head_out_spec, head_out_spec, head_out_spec],
        out_shape=[jax.ShapeDtypeStruct((B, n_heads, S, d_k), jnp.bfloat16)] * 3,
        compiler_params=pltpu.CompilerParams(
            dimension_semantics=("parallel", "parallel"),
            vmem_limit_bytes=vmem_limit),
        cost_estimate=pl.CostEstimate(
            flops=2 * B * S * D * 3 * D, transcendentals=0,
            bytes_accessed=x.size * 4 + wqkv.size * 2 + 3 * B * S * D * 2),
    )(x, wqkv, bqkv)

    # ---- 2) attention + output projection + residual + LayerNorm1 ----
    attn_flops = 4 * B * n_heads * S * S * d_k + 2 * B * S * D * D
    attn_bytes = 3 * B * S * D * 2 + B * S * S + 2 * B * S * D * 4 + D * D * 2
    y1_shape = jax.ShapeDtypeStruct((B, S, D), jnp.float32)

    if return_attn_weights:
        mask_map = ((lambda b, qi: (0, qi, 0)) if mask_is_shared
                    else (lambda b, qi: (b, qi, 0)))
        y1, attw = pl.pallas_call(
            attn_weights_ln1_kernel,
            grid=(B, S // tq),
            in_specs=[
                pl.BlockSpec((1, n_heads, tq, d_k), lambda b, qi: (b, 0, qi, 0)),
                pl.BlockSpec((1, n_heads, S, d_k), lambda b, qi: (b, 0, 0, 0)),
                pl.BlockSpec((1, n_heads, S, d_k), lambda b, qi: (b, 0, 0, 0)),
                pl.BlockSpec((1, tq, S), mask_map),
                pl.BlockSpec((1, tq, D), lambda b, qi: (b, qi, 0)),
                _const_spec((D, D)), _const_spec((1, D)),
                _const_spec((1, D)), _const_spec((1, D)),
            ],
            out_specs=[
                pl.BlockSpec((1, tq, D), lambda b, qi: (b, qi, 0)),
                pl.BlockSpec((1, n_heads, tq, S), lambda b, qi: (b, 0, qi, 0)),
            ],
            out_shape=[y1_shape,
                       jax.ShapeDtypeStruct((B, n_heads, S, S), jnp.bfloat16)],
            compiler_params=pltpu.CompilerParams(
                dimension_semantics=("parallel", "parallel"),
                vmem_limit_bytes=vmem_limit),
            cost_estimate=pl.CostEstimate(
                flops=attn_flops, transcendentals=B * n_heads * S * S,
                bytes_accessed=attn_bytes + B * n_heads * S * S * 2),
        )(q, k, v, mask_i8, x, wfc, params["bfc"], params["g1"], params["be1"])
    else:
        attw = None
        mask_map = ((lambda b, qi, ki: (0, qi, ki)) if mask_is_shared
                    else (lambda b, qi, ki: (b, qi, ki)))
        y1 = pl.pallas_call(
            flash_attn_ln1_kernel,
            grid=(B, S // tq, S // tk),
            in_specs=[
                pl.BlockSpec((1, n_heads, tq, d_k), lambda b, qi, ki: (b, 0, qi, 0)),
                pl.BlockSpec((1, n_heads, tk, d_k), lambda b, qi, ki: (b, 0, ki, 0)),
                pl.BlockSpec((1, n_heads, tk, d_k), lambda b, qi, ki: (b, 0, ki, 0)),
                pl.BlockSpec((1, tq, tk), mask_map),
                pl.BlockSpec((1, tq, D), lambda b, qi, ki: (b, qi, 0)),
                _const_spec((D, D)), _const_spec((1, D)),
                _const_spec((1, D)), _const_spec((1, D)),
            ],
            out_specs=pl.BlockSpec((1, tq, D), lambda b, qi, ki: (b, qi, 0)),
            out_shape=y1_shape,
            scratch_shapes=[
                pltpu.VMEM((n_heads, tq, 1), jnp.float32),     # running max
                pltpu.VMEM((n_heads, tq, 1), jnp.float32),     # running denom
                pltpu.VMEM((n_heads, tq, d_k), jnp.float32),   # running context
            ],
            compiler_params=pltpu.CompilerParams(
                dimension_semantics=("parallel", "parallel", "arbitrary"),
                vmem_limit_bytes=vmem_limit),
            cost_estimate=pl.CostEstimate(
                flops=attn_flops, transcendentals=B * n_heads * S * S,
                bytes_accessed=attn_bytes),
        )(q, k, v, mask_i8, x, wfc, params["bfc"], params["g1"], params["be1"])

    # ---- 3) FFN (d_ff reduction tiles, streamed w1/w2) + residual + LayerNorm2 ----
    y2 = pl.pallas_call(
        ffn_ln2_kernel,
        grid=(B, S // tq, d_ff // tf),
        in_specs=[
            pl.BlockSpec((1, tq, D), lambda b, si, fi: (b, si, 0)),
            pl.BlockSpec((D, tf), lambda b, si, fi: (0, fi)),
            pl.BlockSpec((1, tf), lambda b, si, fi: (0, fi)),
            pl.BlockSpec((tf, D), lambda b, si, fi: (fi, 0)),
            _const_spec((1, D)), _const_spec((1, D)), _const_spec((1, D)),
        ],
        out_specs=pl.BlockSpec((1, tq, D), lambda b, si, fi: (b, si, 0)),
        out_shape=jax.ShapeDtypeStruct((B, S, D), jnp.float32),
        scratch_shapes=[pltpu.VMEM((tq, D), jnp.float32)],
        compiler_params=pltpu.CompilerParams(
            dimension_semantics=("parallel", "parallel", "arbitrary"),
            vmem_limit_bytes=vmem_limit),
        cost_estimate=pl.CostEstimate(
            flops=4 * B * S * D * d_ff, transcendentals=B * S * d_ff,
            bytes_accessed=2 * B * S * D * 4 + 2 * D * d_ff * 2),
    )(y1, w1, params["b1"], w2, params["b2"], params["g2"], params["be2"])

    return y2, attw


# ----------------------------------------------------------------------------
# pure-JAX f32 reference matching the PyTorch forward (dropout = identity)
# ----------------------------------------------------------------------------
def reference(x, attn_mask, params, n_heads):
    B, S, D = x.shape
    d_k = D // n_heads
    q = x @ params["wq"] + params["bq"]
    k = x @ params["wk"] + params["bk"]
    v = x @ params["wv"] + params["bv"]
    qh = q.reshape(B, S, n_heads, d_k).transpose(0, 2, 1, 3)
    kh = k.reshape(B, S, n_heads, d_k).transpose(0, 2, 1, 3)
    vh = v.reshape(B, S, n_heads, d_k).transpose(0, 2, 1, 3)
    scores = jnp.einsum("bhqd,bhkd->bhqk", qh, kh) / math.sqrt(d_k)
    scores = jnp.where(attn_mask[:, None] != 0, -1e9, scores)
    w = jax.nn.softmax(scores, axis=-1)
    ctx = jnp.einsum("bhqk,bhkd->bhqd", w, vh).transpose(0, 2, 1, 3).reshape(B, S, D)
    attn = ctx @ params["wfc"] + params["bfc"]
    y1 = _layernorm(attn + x, params["g1"], params["be1"])
    h = _gelu_exact(y1 @ params["w1"] + params["b1"])
    f = h @ params["w2"] + params["b2"]
    y2 = _layernorm(f + y1, params["g2"], params["be2"])
    return y2, w


if __name__ == "__main__":
    B, S, D, H, D_FF = 2, 8, 32, 4, 64

    key = jax.random.PRNGKey(0)
    keys = jax.random.split(key, 16)

    def rnd(kk, shape, std=0.02):
        return (std * jax.random.normal(kk, shape)).astype(jnp.float32)

    params = {
        "wq": rnd(keys[0], (D, D)),  "bq": rnd(keys[1], (1, D)),
        "wk": rnd(keys[2], (D, D)),  "bk": rnd(keys[3], (1, D)),
        "wv": rnd(keys[4], (D, D)),  "bv": rnd(keys[5], (1, D)),
        "wfc": rnd(keys[6], (D, D)), "bfc": rnd(keys[7], (1, D)),
        "w1": rnd(keys[8], (D, D_FF)),  "b1": rnd(keys[9], (1, D_FF)),
        "w2": rnd(keys[10], (D_FF, D)), "b2": rnd(keys[11], (1, D)),
        "g1": 1.0 + rnd(keys[12], (1, D)), "be1": rnd(keys[13], (1, D)),
        "g2": 1.0 + rnd(keys[14], (1, D)), "be2": rnd(keys[15], (1, D)),
    }

    xkey, _ = jax.random.split(jax.random.PRNGKey(42))
    x = jax.random.normal(xkey, (B, S, D), dtype=jnp.float32)

    # causal attention mask (nonzero == masked out), shared across the batch
    causal = jnp.triu(jnp.ones((S, S), dtype=jnp.int32), k=1)
    attn_mask = jnp.broadcast_to(causal, (B, S, S))

    ref_out, ref_w = reference(x, attn_mask, params, H)

    # Path 1: attention weights requested (exact per-q-tile softmax, weights in bf16)
    out, attw = decode_layer(x, attn_mask, params, H,
                             return_attn_weights=True, mask_is_shared=True)
    jax.block_until_ready((out, attw))
    # Tolerances account for bf16 matmul operands / bf16 weight storage.
    assert jnp.allclose(out, ref_out, atol=2e-2, rtol=2e-2), "output mismatch (weights path)"
    assert jnp.allclose(attw.astype(jnp.float32), ref_w, atol=1e-2), "attn weights mismatch"

    # Path 2: flash (online-softmax) path, no S^2 materialization
    out2, attw2 = decode_layer(x, attn_mask, params, H,
                               return_attn_weights=False, mask_is_shared=True)
    jax.block_until_ready(out2)
    assert attw2 is None
    assert jnp.allclose(out2, ref_out, atol=2e-2, rtol=2e-2), "output mismatch (flash path)"

    print("KERNEL_OK")
</pallas_src>

<mosaic_0001>
module attributes {stable_mosaic.version = 11 : i64} {
  func.func @_probe_copy_kernel(%arg0: i32, %arg1: memref<8x128xf32, #tpu.memory_space<vmem>>, %arg2: memref<8x128xf32, #tpu.memory_space<vmem>>) attributes {dimension_semantics = [#tpu.dimension_semantics<arbitrary>], iteration_bounds = array<i64: 1>, scalar_prefetch = 0 : i64, scratch_operands = 0 : i64, tpu.core_type = #tpu.core_type<tc>, window_params = [{pipeline_mode = #tpu.pipeline_mode<synchronous>, transform_indices = @transform_0, window_bounds = array<i64: 8, 128>}, {pipeline_mode = #tpu.pipeline_mode<synchronous>, transform_indices = @transform_1, window_bounds = array<i64: 8, 128>}]} {
    %c0 = arith.constant 0 : index
    %c0_0 = arith.constant 0 : index
    %0 = vector.load %arg1[%c0, %c0_0] : memref<8x128xf32, #tpu.memory_space<vmem>>, vector<8x128xf32>
    %c0_1 = arith.constant 0 : index
    %c0_2 = arith.constant 0 : index
    %1 = vector.load %arg2[%c0_1, %c0_2] : memref<8x128xf32, #tpu.memory_space<vmem>>, vector<8x128xf32>
    tpu.vector_store %arg2[%c0_1, %c0_2], %0 {strides = array<i32>} : memref<8x128xf32, #tpu.memory_space<vmem>>, vector<8x128xf32>,
    return
  }
  func.func @transform_0(%arg0: i32) -> (i32, i32) {
    %c0_i32 = arith.constant 0 : i32
    %c0_i32_0 = arith.constant 0 : i32
    %c0_i32_1 = arith.constant 0 : i32
    return %c0_i32, %c0_i32_0 : i32, i32
  }
  func.func @transform_1(%arg0: i32) -> (i32, i32) {
    %c0_i32 = arith.constant 0 : i32
    %c0_i32_0 = arith.constant 0 : i32
    %c0_i32_1 = arith.constant 0 : i32
    return %c0_i32, %c0_i32_0 : i32, i32
  }
}

module attributes {stable_mosaic.version = 11 : i64} {
  func.func @qkv_proj_kernel(%arg0: i32, %arg1: i32, %arg2: memref<1x8x32xf32, #tpu.memory_space<vmem>>, %arg3: memref<32x96xbf16, #tpu.memory_space<vmem>>, %arg4: memref<1x96xf32, #tpu.memory_space<vmem>>, %arg5: memref<1x4x8x8xbf16, #tpu.memory_space<vmem>>, %arg6: memref<1x4x8x8xbf16, #tpu.memory_space<vmem>>, %arg7: memref<1x4x8x8xbf16, #tpu.memory_space<vmem>>) attributes {dimension_semantics = [#tpu.dimension_semantics<parallel>, #tpu.dimension_semantics<parallel>], iteration_bounds = array<i64: 2, 1>, scalar_prefetch = 0 : i64, scratch_operands = 0 : i64, tpu.core_type = #tpu.core_type<tc>, window_params = [{transform_indices = @transform_0, window_bounds = array<i64: 1, 8, 32>}, {pipeline_mode = #tpu.pipeline_mode<synchronous>, transform_indices = @transform_1, window_bounds = array<i64: 32, 96>}, {pipeline_mode = #tpu.pipeline_mode<synchronous>, transform_indices = @transform_2, window_bounds = array<i64: 1, 96>}, {transform_indices = @transform_3, window_bounds = array<i64: 1, 4, 8, 8>}, {transform_indices = @transform_4, window_bounds = array<i64: 1, 4, 8, 8>}, {transform_indices = @transform_5, window_bounds = array<i64: 1, 4, 8, 8>}]} {
    %c0 = arith.constant 0 : index
    %c0_0 = arith.constant 0 : index
    %c0_1 = arith.constant 0 : index
    %0 = vector.load %arg2[%c0, %c0_0, %c0_1] : memref<1x8x32xf32, #tpu.memory_space<vmem>>, vector<1x8x32xf32>
    %1 = vector.shape_cast %0 : vector<1x8x32xf32> to vector<8x32xf32>
    %2 = arith.truncf %1 : vector<8x32xf32> to vector<8x32xbf16>
    %c0_2 = arith.constant 0 : index
    %c0_3 = arith.constant 0 : index
    %3 = vector.load %arg3[%c0_2, %c0_3] : memref<32x96xbf16, #tpu.memory_space<vmem>>, vector<32x96xbf16>
    %cst = arith.constant dense<0.000000e+00> : vector<8x96xf32>
    %4 = tpu.matmul %2, %3, %cst {dimension_numbers = #tpu.dot_dimension_numbers<[1], [0], [0], [1], [0, 0, 1, 1], [], []>} : vector<8x32xbf16>, vector<32x96xbf16>, vector<8x96xf32> -> vector<8x96xf32>
    %c0_4 = arith.constant 0 : index
    %c0_5 = arith.constant 0 : index
    %5 = vector.load %arg4[%c0_4, %c0_5] : memref<1x96xf32, #tpu.memory_space<vmem>>, vector<1x96xf32>
    %6 = vector.broadcast %5 : vector<1x96xf32> to vector<8x96xf32>
    %7 = arith.addf %4, %6 : vector<8x96xf32>
    %8 = vector.shape_cast %7 : vector<8x96xf32> to vector<8x12x8xf32>
    %9 = tpu.transpose %8, [1, 0, 2] : vector<8x12x8xf32> -> vector<12x8x8xf32>
    %10 = arith.truncf %9 : vector<12x8x8xf32> to vector<12x8x8xbf16>
    %11 = vector.extract_strided_slice %10 {offsets = [0, 0, 0], sizes = [4, 8, 8], strides = [1, 1, 1]} : vector<12x8x8xbf16> to vector<4x8x8xbf16>
    %c0_6 = arith.constant 0 : index
    %c0_7 = arith.constant 0 : index
    %c0_8 = arith.constant 0 : index
    %c0_9 = arith.constant 0 : index
    %12 = vector.load %arg5[%c0_6, %c0_7, %c0_8, %c0_9] : memref<1x4x8x8xbf16, #tpu.memory_space<vmem>>, vector<1x4x8x8xbf16>
    %13 = vector.shape_cast %12 : vector<1x4x8x8xbf16> to vector<4x8x8xbf16>
    %14 = vector.shape_cast %11 : vector<4x8x8xbf16> to vector<1x4x8x8xbf16>
    tpu.vector_store %arg5[%c0_6, %c0_7, %c0_8, %c0_9], %14 {strides = array<i32>} : memref<1x4x8x8xbf16, #tpu.memory_space<vmem>>, vector<1x4x8x8xbf16>,
    %15 = vector.extract_strided_slice %10 {offsets = [4, 0, 0], sizes = [4, 8, 8], strides = [1, 1, 1]} : vector<12x8x8xbf16> to vector<4x8x8xbf16>
    %c0_10 = arith.constant 0 : index
    %c0_11 = arith.constant 0 : index
    %c0_12 = arith.constant 0 : index
    %c0_13 = arith.constant 0 : index
    %16 = vector.load %arg6[%c0_10, %c0_11, %c0_12, %c0_13] : memref<1x4x8x8xbf16, #tpu.memory_space<vmem>>, vector<1x4x8x8xbf16>
    %17 = vector.shape_cast %16 : vector<1x4x8x8xbf16> to vector<4x8x8xbf16>
    %18 = vector.shape_cast %15 : vector<4x8x8xbf16> to vector<1x4x8x8xbf16>
    tpu.vector_store %arg6[%c0_10, %c0_11, %c0_12, %c0_13], %18 {strides = array<i32>} : memref<1x4x8x8xbf16, #tpu.memory_space<vmem>>, vector<1x4x8x8xbf16>,
    %19 = vector.extract_strided_slice %10 {offsets = [8, 0, 0], sizes = [4, 8, 8], strides = [1, 1, 1]} : vector<12x8x8xbf16> to vector<4x8x8xbf16>
    %c0_14 = arith.constant 0 : index
    %c0_15 = arith.constant 0 : index
    %c0_16 = arith.constant 0 : index
    %c0_17 = arith.constant 0 : index
    %20 = vector.load %arg7[%c0_14, %c0_15, %c0_16, %c0_17] : memref<1x4x8x8xbf16, #tpu.memory_space<vmem>>, vector<1x4x8x8xbf16>
    %21 = vector.shape_cast %20 : vector<1x4x8x8xbf16> to vector<4x8x8xbf16>
    %22 = vector.shape_cast %19 : vector<4x8x8xbf16> to vector<1x4x8x8xbf16>
    tpu.vector_store %arg7[%c0_14, %c0_15, %c0_16, %c0_17], %22 {strides = array<i32>} : memref<1x4x8x8xbf16, #tpu.memory_space<vmem>>, vector<1x4x8x8xbf16>,
    return
  }
  func.func @transform_0(%arg0: i32, %arg1: i32) -> (i32, i32, i32) {
    %c0_i32 = arith.constant 0 : i32
    %c0_i32_0 = arith.constant 0 : i32
    return %arg0, %arg1, %c0_i32 : i32, i32, i32
  }
  func.func @transform_1(%arg0: i32, %arg1: i32) -> (i32, i32) {
    %c0_i32 = arith.constant 0 : i32
    %c0_i32_0 = arith.constant 0 : i32
    %c0_i32_1 = arith.constant 0 : i32
    return %c0_i32, %c0_i32_0 : i32, i32
  }
  func.func @transform_2(%arg0: i32, %arg1: i32) -> (i32, i32) {
    %c0_i32 = arith.constant 0 : i32
    %c0_i32_0 = arith.constant 0 : i32
    %c0_i32_1 = arith.constant 0 : i32
    return %c0_i32, %c0_i32_0 : i32, i32
  }
  func.func @transform_3(%arg0: i32, %arg1: i32) -> (i32, i32, i32, i32) {
    %c0_i32 = arith.constant 0 : i32
    %c0_i32_0 = arith.constant 0 : i32
    %c0_i32_1 = arith.constant 0 : i32
    return %arg0, %c0_i32, %arg1, %c0_i32_0 : i32, i32, i32, i32
  }
  func.func @transform_4(%arg0: i32, %arg1: i32) -> (i32, i32, i32, i32) {
    %c0_i32 = arith.constant 0 : i32
    %c0_i32_0 = arith.constant 0 : i32
    %c0_i32_1 = arith.constant 0 : i32
    return %arg0, %c0_i32, %arg1, %c0_i32_0 : i32, i32, i32, i32
  }
  func.func @transform_5(%arg0: i32, %arg1: i32) -> (i32, i32, i32, i32) {
    %c0_i32 = arith.constant 0 : i32
    %c0_i32_0 = arith.constant 0 : i32
    %c0_i32_1 = arith.constant 0 : i32
    return %arg0, %c0_i32, %arg1, %c0_i32_0 : i32, i32, i32, i32
  }
}

</mosaic_0001>

<bundles_post_ra>
// kernel: tpu_custom_call.1
= control target key start
LH: loop header
LB: loop body
LE: loop exit
PB: predicated region body
PF: predicated region fallthrough
CT: control target
= control target key end

     0   :  { %6 = vsyncpa [#allocation3], 0  ;;  %s114_s0 = inlined_call_operand.hbm [shape: f32[8,128], index: 0, kind: input, shape index: {}]   ;;  %s115_s1 = inlined_call_operand.hbm [shape: f32[8,128], index: 1, kind: output, shape index: {}]  }
   0x1   :  { %7 = vsyncpa [#allocation4], 0  ;;  %s13_s8 = sshll.u32 %s114_s0, 4  ;;  %s96_s9 = smov [#allocation2]   ;;  %s14_s8 = int_to_ptr.hbm [resolvable:$true] %s13_s8 }
   0x2   :  { %s15_s10 = sshll.u32 %s96_s9, 4  ;;  %s16_s10 = int_to_ptr.vmem [resolvable:$true] %s15_s10 }
   0x3   :  { %18 = dma.hbm_to_vmem [thread:$0]  %s14_s8, 128, %s16_s10, [#allocation3]  }
   0x4   :  { %92 = dma.done.wait [#allocation3], 128  }
   0x5   :  { %93 = vsyncadd [#allocation3], 4294967168  ;;  %s97_s11 = smov [#allocation5]   ;;  %s32_s15 = sshll.u32 %s115_s1, 4  ;;  %v23_v0 = vld [vmem:[#allocation2] sm:$0xff]  ;;  %s33_s15 = int_to_ptr.hbm [resolvable:$true] %s32_s15 }
   0x6   :  { %s30_s12 = sshll.u32 %s97_s11, 4  ;;  %24 = vst [vmem:[#allocation5] sm:$0xff] %v23_v0  ;;  %s31_s12 = int_to_ptr.vmem [resolvable:$true] %s30_s12 }
   0x7   :  { %35 = dma.vmem_to_hbm [thread:$0]  %s31_s12, 128, %s33_s15, [#allocation4]  }
   0x8   :  { %94 = dma.done.wait [#allocation4], 128  }
   0x9   :  { %95 = vsyncadd [#allocation4], 4294967168 }
   0xa   :  { %40 = vsyncpa [#allocation3], 1 }
   0xb   :  { %41 = vsyncpa [#allocation4], 1 }

// kernel: tpu_custom_call.1
= control target key start
LH: loop header
LB: loop body
LE: loop exit
PB: predicated region body
PF: predicated region fallthrough
CT: control target
= control target key end

     0   :  { %s1722_s0 = inlined_call_operand.hbm [shape: f32[2,8,32], index: 0, kind: input, shape index: {}]   ;;  %s1723_s1 = inlined_call_operand.hbm [shape: bf16[32,96], index: 1, kind: input, shape index: {}]   ;;  %s1724_s2 = inlined_call_operand.vmem [shape: f32[1,96], index: 2, kind: input, shape index: {}]   ;;  %s1725_s3 = inlined_call_operand.hbm [shape: bf16[2,4,8,8], index: 3, kind: output, shape index: {0}]   ;;  %s1726_s4 = inlined_call_operand.hbm [shape: bf16[2,4,8,8], index: 4, kind: output, shape index: {1}]   ;;  %s1727_s5 = inlined_call_operand.hbm [shape: bf16[2,4,8,8], index: 5, kind: output, shape index: {2}]  }
   0x1   :  { %1731 = sst [smem:[#allocation15_spill]] %s1722_s0 }
   0x2   :  { %1732 = sst [smem:[#allocation16_spill]] %s1723_s1 }
   0x3   :  { %11 = vsyncpa [#allocation3], 0 }
   0x4   :  { %13 = vsyncpa [#allocation3 + $0x1], 0 }
   0x5   :  { %14 = vsyncpa [#allocation6], 0 }
   0x6   :  { %15 = vsyncpa [#allocation4], 0 }
   0x7   :  { %17 = vsyncpa [#allocation4 + $0x1], 0 }
   0x8   :  { %18 = vsyncpa [#allocation9], 0 }
   0x9   :  { %20 = vsyncpa [#allocation9 + $0x1], 0  ;;  %s1349_s18 = smov 0   ;;  %s1351_s19 = smov 0  }
   0xa   :  { %s1353_s20 = smov 0   ;;  %s1355_s21 = smov 0  }
   0xb   :  { %s1357_s22 = smov 0   ;;  %s1359_s23 = smov 0  }
   0xc LB: > { %s1380_s24 = sadd.s32 4294967295, %s1300_s23   ;;  %p958_p0 = scmp.ge.s32.totalorder %s1300_s23, 1  ;;  %s1300_s23 = sphi %s1359_s23, %s26_s23   ;;  %s1296_s22 = sphi %s1357_s22, %s1746_s22   ;;  %s1292_s21 = sphi %s1355_s21, %s1745_s21   ;;  %s1288_s20 = sphi %s1353_s20, %s1744_s20   ;;  %s1284_s19 = sphi %s1351_s19, %s1743_s19   ;;  %s1280_s18 = sphi %s1349_s18, %s1742_s18  }
   0xd   : > { %p61_p1 = scmp.eq.s32.totalorder %s1380_s24, 0  ;;  %p197_p2 = scmp.lt.s32.totalorder %s1300_s23, 3 }
   0xe   : > { %s1733_s1 = sld [smem:[#allocation16_spill]]  ;;  %s1302_s29 = smov [#allocation5]  }
   0xf   : > { %p1388_p3 = pnand %p958_p0, %p197_p2  ;;  %s210_s30 = sshll.u32 %s1302_s29, 4  ;;  %s211_s30 = int_to_ptr.vmem [resolvable:$true] %s210_s30 }
  0x10   : > { %p960_p6 = scmp.ge.s32.totalorder %s1300_s23, 2  ;;  %s1303_s6 = smov 64  }
  0x11   : > { %p1006_p4 = pneg %p1388_p3  ;;  %s1304_s7 = smov 4  }
  0x12   : > { %s1728_s8 = sadd.s32 4294967294, %s1300_s23   ;;  %s38_s9 = sadd.s32 1, %s1296_s22 }
  0x13   : > { %p1007_p5 = pnand %p1006_p4, %p61_p1  ;;  %s47_s10 = sadd.s32 1, %s1288_s20 }
  0x14   : > { %s208_s27 = sshll.u32 %s1733_s1, 4  ;;  %p40_p7 = scmp.ge.s32.totalorder %s38_s9, 2  ;;  %s209_s27 = int_to_ptr.hbm [resolvable:$true] %s208_s27 }
  0x15   : > { %1009 = dma.hbm_to_vmem [thread:$0]  (!%p1007_p5), %s209_s27, 256, %s211_s30, [#allocation6], %s1303_s6, %s1303_s6, %s1304_s7  }
  0x16   : > { %p54_p8 = scmp.ne.s32.totalorder %s1288_s20, %s1284_s19  ;;  %p55_p9 = scmp.eq.s32.totalorder %s1300_s23, 0 }
  0x17   : > { %p60_p10 = scmp.ne.s32.totalorder %s1284_s19, %s1280_s18  ;;  %s1748_s9 = smov (%p40_p7, %s38_s9), 0 }
  0x18   : > { %p1407_p11 = por %p55_p9, %p54_p8  ;;  %s42_s13 = ssub.s32 %s1296_s22, %s1748_s9 }
  0x19   : > { %p1413_p12 = por %p61_p1, %p60_p10  ;;  %p128_p13 = scmp.eq.s32.totalorder %s1380_s24, 1 }
  0x1a   : > { %p45_p0 = scmp.eq.s32.totalorder %s42_s13, 0  ;;  %p134_p2 = scmp.eq.s32.totalorder %s1728_s8, 1 }
  0x1b   : > { %p1422_p4 = por %p128_p13, %p54_p8  ;;  %p1025_p5 = scmp.lt.s32.totalorder %s1300_s23, 2 }
  0x1c   : > { %s1428_s15 = scalar_select %p45_p0, %s1288_s20, %s47_s10  }
  0x1d   : > { %p1430_p7 = por %p134_p2, %p60_p10  ;;  %s227_s17 = sand.u32 1, %s1288_s20  }
  0x1e   : > { %s961_s25 = sshll.u32 %s227_s17, 3  ;;  %s962_s26 = sshll.u32 %s1296_s22, 3 }
  0x1f   : > { %s1739_s0 = sld [smem:[#allocation15_spill]]  ;;  %s231_s6 = scalar_lea.vmem [#allocation2], %s961_s25 }
  0x20   : > { %s240_s7 = sshll.u32 %s231_s6, 4  ;;  %p1011_p8 = pnand %p1025_p5, %p1407_p11  ;;  %s241_s7 = int_to_ptr.vmem [resolvable:$true] %s240_s7 }
  0x21   : > { %s228_s10 = scalar_lea.sflag [#allocation3], %s227_s17  ;;  %s1444_s8 = sand.u32 (!%p1388_p3), 1, %s1284_s19  }
  0x22   : > { %s964_s27 = sshll.u32 (!%p1388_p3), %s1444_s8, 3 }
  0x23   : > { %249 = sbr.rel (%p1388_p3) target bundleno = 376 (0x178), region = 32  ;;  %s255_s25 = scalar_lea.vmem (!%p1388_p3), [#allocation2], %s964_s27 }
  0x25   : > { %s236_s30 = scalar_lea.hbm %s1739_s0, %s962_s26  ;;  %s252_s26 = scalar_lea.sflag (!%p1388_p3), [#allocation3], %s1444_s8 }
  0x26   : > { %s238_s13 = sshll.u32 %s236_s30, 4  ;;  %s239_s13 = int_to_ptr.hbm [resolvable:$true] %s238_s13 }
  0x27   : > { %1013 = dma.hbm_to_vmem [thread:$0]  (!%p1011_p8), %s239_s13, 128, %s241_s7, %s228_s10  }
  0x28   : > { %1263 = dma.done.wait (%p1413_p12), %s252_s26, 128  }
  0x29   : > { %1265 = vsyncadd (%p1413_p12), %s252_s26, 4294967168 }
  0x2a   : > { %1267 = dma.done.wait (%p61_p1), [#allocation6], 256  }
  0x2b   : > { %1269 = vsyncadd (%p61_p1), [#allocation6], 4294967040  ;;  %v990_v0 = vld [vmem:[#allocation5 + $0x8] sm:$0xff]  ;;  %v989_v1 = vld [vmem:[#allocation5] sm:$0xff]  ;;  %vm321_vm0 = vcmask 261120   ;;  %s1305_s12 = smov 112  }
  0x2c   : > { %331 = vmatpush.bf16.msra.mxu0 %v990_v0  ;;  %v299_v2 = vld [vmem:[%s255_s25] sm:$0xff]  ;;  %s1306_s17 = smov 88   ;;  %s1307_s29 = smov 120   ;;  %v1316_v11 = vmov 1983009808   ;;  %vm373_vm1 = vcmask 1047556  }
  0x2d   : > { %v300_v3 = vpack.c.bf16 %v299_v2, %v299_v2  ;;  %v1093_v4 = vld [vmem:[%s1724_s2] ss:$0 sm:$0xff]  ;;  %s1308_s30 = smov 96   ;;  %s1309_s6 = smov 72   ;;  %v378_v12 = vunpack.c.l.s4 %v1316_v11  ;;  %v1317_v27 = vmov 1934713408  }
  0x2e   : > { %s1310_s7 = smov 104   ;;  %s1311_s13 = smov 48   ;;  %v426_v28 = vunpack.c.l.s4 %v1317_v27  ;;  %vm719_vm2 = vcmask 60416  }
  0x2f   : > { %s1729_s10 = smov 64   ;;  %s1313_s27 = smov 80   ;;  %v1460_v15 = vunpack.c.0.s8 %v378_v12 }
  0x30   : > { %332 = vmatpush.bf16.msra.mxu0 %v989_v1  ;;  %s1314_s26 = smov 40   ;;  %s1315_s25 = smov 56   ;;  %v1472_v37 = vunpack.c.0.s8 %v426_v28 }
  0x31   : > { %s1544_s28 = sshll.u32 %s1292_s21, 4  ;;  %s1547_s11 = sshll.u32 %s1444_s8, 4 }
  0x33   : > { %977 = vmatmul.msk.bf16.vlgmr.msra.gmra.mxu0 %vm321_vm0, %v300_v3 }
  0xb0   : > { %v334_v5 = vpop.f32.mrf.mxu0 }
  0xb1   : > { %v335_v6 = vadd.f32 %v1093_v4, %v334_v5 }
  0xb3   : > { %342 = vrot.lane.b32.xlu2 %v335_v6, %s1305_s12  ;;  %351 = vrot.lane.b32.xlu1 %v335_v6, %s1306_s17  ;;  %v375_v14 = vrot.slane %v335_v6, 4  ;;  %s773_s17 = scalar_lea.hbm %s1726_s4, %s1544_s28 }
  0xb4   : > { %339 = vrot.lane.b32.xlu0 %v335_v6, %s1307_s29  ;;  %s737_s29 = sand.u32 1, %s1380_s24  }
  0xb8   : > { %v336_v7 = vpop.f32.mrf.mxu0 }
  0xbb   : > { %348 = vrot.lane.b32.xlu2 %v335_v6, %s1308_s30  ;;  %357 = vrot.lane.b32.xlu1 %v335_v6, %s1309_s6  ;;  %s290_s30 = scalar_lea.vmem [#allocation8], %s1547_s11 }
  0xbc   : > { %345 = vrot.lane.b32.xlu0 %v335_v6, %s1310_s7  ;;  %s774_s6 = sshll.u32 %s290_s30, 4  ;;  %s1563_s7 = sshll.u32 %s773_s17, 4  ;;  %s1577_s6 = int_to_ptr.vmem [resolvable:$true] %s774_s6  ;;  %s777_s7 = int_to_ptr.hbm [resolvable:$true] %s1563_s7 }
  0xbd   : > { %s1596_s17 = scalar_lea.sflag [#allocation9], %s737_s29 }
  0xc3   : > { %366 = vrot.lane.b32.xlu2 %v335_v6, %s1311_s13  ;;  %360 = vrot.lane.b32.xlu1 %v335_v6, %s1729_s10  ;;  %s1168_s13 = sshra.s32 %s777_s7, 4  ;;  %s1174_s10 = scalar_lea.hbm %s1726_s4, 32  ;;  %s1169_s13 = int_to_ptr.hbm [resolvable:$true] %s1168_s13 }
  0xc4   : > { %354 = vrot.lane.b32.xlu0 %v335_v6, %s1313_s27  ;;  %s1170_s27 = scalar_lea.hbm %s1169_s13, 16  ;;  %p1175_p10 = scmp.lt.s32.totalorder %s1169_s13, %s1726_s4 }
  0xc5   : > { %p1171_p1 = scmp.ne.s32.totalorder %s1169_s13, %s1170_s27  ;;  %p1176_p11 = scmp.lt.s32.totalorder %s1174_s10, %s1170_s27 }
  0xc7   : > { %p1172_p3 = pnand %p1171_p1, %p1422_p4  ;;  %p1177_p12 = por %p1176_p11, %p1175_p10 }
  0xc9   : > { %p1173_p9 = pneg %p1172_p3 }
  0xcb   : > { %369 = vrot.lane.b32.xlu1 %v335_v6, %s1314_s26  ;;  %s755_s26 = scalar_lea.hbm %s1725_s3, %s1544_s28  ;;  %p1178_p13 = pnand %p1177_p12, %p1173_p9 }
  0xcc   : > { %363 = vrot.lane.b32.xlu0 %v335_v6, %s1315_s25  ;;  %s1587_s25 = scalar_lea.vmem [#allocation7], %s1547_s11  ;;  %s1590_s21 = sshll.u32 %s755_s26, 4  ;;  %s759_s21 = int_to_ptr.hbm [resolvable:$true] %s1590_s21 }
  0xcd   : > { %s756_s12 = sshll.u32 %s1587_s25, 4  ;;  %s1623_s12 = int_to_ptr.vmem [resolvable:$true] %s756_s12 }
 0x10d   : > { %v343_v8 = vpop.permute.xlu2 %342 }
 0x10e   : > { %v372_v13 = vrot.slane %v343_v8, 4  ;;  %v376_v16 = vsel %vm373_vm1, %v343_v8, %v375_v14 }
 0x10f   : > { %v384_v22 = vperm.slane %v376_v16, %v1460_v15 }
 0x110   : > { %v374_v20 = vsel %vm373_vm1, %v372_v13, %v335_v6 }
 0x111   : > { %v380_v30 = vperm.slane %v374_v20, %v1460_v15  ;;  %v435_v35 = vrot.slane %v384_v22, 4 }
 0x113   : > { %v423_v39 = vrot.slane %v380_v30, 4 }
 0x115   : > { %v349_v17 = vpop.permute.xlu2 %348 }
 0x116   : > { %v399_v43 = vrot.slane %v349_v17, 4 }
 0x11d   : > { %v367_v47 = vpop.permute.xlu2 %366 }
 0x11e   : > { %v485_v57 = vrot.slane %v367_v47, 4 }
 0x125   : > { %v352_v9 = vpop.permute.xlu1 %351 }
 0x126   : > { %v340_v10 = vpop.permute.xlu0 %339  ;;  %v411_v26 = vrot.slane %v352_v9, 4 }
 0x127   : > { %v387_v18 = vrot.slane %v340_v10, 4 }
 0x12d   : > { %v358_v19 = vpop.permute.xlu1 %357 }
 0x12e   : > { %v346_v21 = vpop.permute.xlu0 %345  ;;  %v409_v23 = vrot.slane %v358_v19, 4  ;;  %v412_v32 = vsel %vm373_vm1, %v358_v19, %v411_v26 }
 0x12f   : > { %v385_v24 = vrot.slane %v346_v21, 4  ;;  %v388_v25 = vsel %vm373_vm1, %v346_v21, %v387_v18  ;;  %v420_v40 = vperm.slane %v412_v32, %v1460_v15 }
 0x130   : > { %v396_v29 = vperm.slane %v388_v25, %v1460_v15  ;;  %v410_v36 = vsel %vm373_vm1, %v409_v23, %v352_v9 }
 0x131   : > { %v386_v31 = vsel %vm373_vm1, %v385_v24, %v340_v10  ;;  %v416_v44 = vperm.slane %v410_v36, %v1460_v15  ;;  %v457_v54 = vrot.slane %v420_v40, 4 }
 0x132   : > { %v392_v33 = vperm.slane %v386_v31, %v1460_v15  ;;  %v433_v34 = vrot.slane %v396_v29, 4  ;;  %v436_v42 = vsel %vm373_vm1, %v396_v29, %v435_v35 }
 0x133   : > { %v444_v50 = vperm.slane %v436_v42, %v1472_v37  ;;  %v445_v58 = vrot.slane %v416_v44, 4 }
 0x134   : > { %v421_v38 = vrot.slane %v392_v33, 4  ;;  %v434_v41 = vsel %vm373_vm1, %v433_v34, %v384_v22  ;;  %v424_v48 = vsel %vm373_vm1, %v392_v33, %v423_v39 }
 0x135   : > { %v440_v49 = vperm.slane %v434_v41, %v1472_v37  ;;  %v361_v51 = vpop.permute.xlu1 %360  ;;  %v432_v59 = vperm.slane %v424_v48, %v1472_v37  ;;  %v483_v2 = vrot.slane %v444_v50, 4 }
 0x136   : > { %v422_v45 = vsel %vm373_vm1, %v421_v38, %v380_v30  ;;  %v355_v46 = vpop.permute.xlu0 %354  ;;  %v487_v61 = vrot.slane %v361_v51, 4  ;;  %v1490_v3 = vsel %vm373_vm1, %v485_v57, %v361_v51 }
 0x137   : > { %v397_v52 = vrot.slane %v355_v46, 4  ;;  %v400_v53 = vsel %vm373_vm1, %v355_v46, %v399_v43  ;;  %v428_v55 = vperm.slane %v422_v45, %v1472_v37  ;;  %v479_v1 = vrot.slane %v440_v49, 4 }
 0x138   : > { %v408_v56 = vperm.slane %v400_v53, %v1460_v15  ;;  %v475_v13 = vrot.slane %v432_v59, 4  ;;  %v488_v14 = vsel %vm373_vm1, %v367_v47, %v487_v61 }
 0x139   : > { %v398_v60 = vsel %vm373_vm1, %v397_v52, %v349_v17  ;;  %v471_v5 = vrot.slane %v428_v55, 4 }
 0x13a   : > { %v404_v62 = vperm.slane %v398_v60, %v1460_v15  ;;  %v458_v63 = vsel %vm373_vm1, %v457_v54, %v408_v56  ;;  %v459_v0 = vrot.slane %v408_v56, 4 }
 0x13b   : > { %v464_v4 = vperm.slane %v458_v63, %v1472_v37 }
 0x13c   : > { %v446_v6 = vsel %vm373_vm1, %v445_v58, %v404_v62  ;;  %v447_v7 = vrot.slane %v404_v62, 4  ;;  %v460_v8 = vsel %vm373_vm1, %v420_v40, %v459_v0 }
 0x13d   : > { %v452_v9 = vperm.slane %v446_v6, %v1472_v37  ;;  %v468_v10 = vperm.slane %v460_v8, %v1472_v37  ;;  %v477_v11 = vrot.slane %v464_v4, 4  ;;  %v480_v12 = vsel %vm373_vm1, %v464_v4, %v479_v1  ;;  %v370_v8 = vpop.permute.xlu1 %369 }
 0x13e   : > { %v448_v16 = vsel %vm373_vm1, %v416_v44, %v447_v7  ;;  %v579_v17 = vrot.slane %v480_v12, 4 }
 0x13f   : > { %v456_v18 = vperm.slane %v448_v16, %v1472_v37  ;;  %v469_v19 = vrot.slane %v452_v9, 4  ;;  %v472_v20 = vsel %vm373_vm1, %v452_v9, %v471_v5  ;;  %v478_v21 = vsel %vm373_vm1, %v477_v11, %v440_v49 }
 0x140   : > { %v481_v22 = vrot.slane %v468_v10, 4  ;;  %v484_v23 = vsel %vm373_vm1, %v468_v10, %v483_v2  ;;  %v555_v24 = vrot.slane %v472_v20, 4  ;;  %v567_v25 = vrot.slane %v478_v21, 4 }
 0x141   : > { %v470_v26 = vsel %vm373_vm1, %v469_v19, %v428_v55  ;;  %v473_v27 = vrot.slane %v456_v18, 4  ;;  %v476_v28 = vsel %vm373_vm1, %v456_v18, %v475_v13  ;;  %v577_v29 = vrot.slane %v484_v23, 4  ;;  %v364_v13 = vpop.permute.xlu0 %363 }
 0x142   : > { %v482_v30 = vsel %vm373_vm1, %v481_v22, %v444_v50  ;;  %v543_v31 = vrot.slane %v470_v26, 4  ;;  %v553_v32 = vrot.slane %v476_v28, 4  ;;  %v556_v33 = vsel %vm373_vm1, %v476_v28, %v555_v24 }
 0x143   : > { %v474_v34 = vsel %vm373_vm1, %v473_v27, %v432_v59  ;;  %v564_v35 = vperm.slane %v556_v33, %v1460_v15  ;;  %v565_v36 = vrot.slane %v482_v30, 4  ;;  %v568_v38 = vsel %vm373_vm1, %v482_v30, %v567_v25 }
 0x144   : > { %v541_v39 = vrot.slane %v474_v34, 4  ;;  %v544_v40 = vsel %vm373_vm1, %v474_v34, %v543_v31  ;;  %v554_v41 = vsel %vm373_vm1, %v553_v32, %v472_v20  ;;  %v576_v42 = vperm.slane %v568_v38, %v1460_v15 }
 0x145   : > { %v552_v43 = vperm.slane %v544_v40, %v1460_v15  ;;  %v560_v44 = vperm.slane %v554_v41, %v1460_v15  ;;  %v566_v45 = vsel %vm373_vm1, %v565_v36, %v478_v21  ;;  %v578_v46 = vsel %vm373_vm1, %v577_v29, %v480_v12 }
 0x146   : > { %v542_v47 = vsel %vm373_vm1, %v541_v39, %v470_v26  ;;  %v572_v48 = vperm.slane %v566_v45, %v1460_v15  ;;  %v580_v49 = vsel %vm373_vm1, %v484_v23, %v579_v17  ;;  %v584_v50 = vperm.slane %v578_v46, %v1460_v15 }
 0x147   : > { %v548_v51 = vperm.slane %v542_v47, %v1460_v15  ;;  %v588_v52 = vperm.slane %v580_v49, %v1460_v15  ;;  %v589_v53 = vrot.slane %v560_v44, 4  ;;  %v601_v54 = vrot.slane %v564_v35, 4 }
 0x148   : > { %v603_v55 = vrot.slane %v552_v43, 4  ;;  %v613_v56 = vrot.slane %v584_v50, 4  ;;  %v615_v57 = vrot.slane %v572_v48, 4  ;;  %v627_v58 = vrot.slane %v576_v42, 4 }
 0x149   : > { %v590_v59 = vsel %vm373_vm1, %v589_v53, %v548_v51  ;;  %v591_v60 = vrot.slane %v548_v51, 4  ;;  %v602_v61 = vsel %vm373_vm1, %v601_v54, %v552_v43  ;;  %v625_v62 = vrot.slane %v588_v52, 4 }
 0x14a   : > { %v596_v63 = vperm.slane %v590_v59, %v1472_v37  ;;  %v604_v0 = vsel %vm373_vm1, %v564_v35, %v603_v55  ;;  %v608_v1 = vperm.slane %v602_v61, %v1472_v37  ;;  %v614_v2 = vsel %vm373_vm1, %v613_v56, %v572_v48 }
 0x14b   : > { %v592_v4 = vsel %vm373_vm1, %v560_v44, %v591_v60  ;;  %v612_v5 = vperm.slane %v604_v0, %v1472_v37  ;;  %v616_v6 = vsel %vm373_vm1, %v584_v50, %v615_v57  ;;  %v620_v7 = vperm.slane %v614_v2, %v1472_v37 }
 0x14c   : > { %v492_v9 = vperm.slane %v1490_v3, %v1460_v15  ;;  %v624_v10 = vperm.slane %v616_v6, %v1472_v37  ;;  %v626_v11 = vsel %vm373_vm1, %v625_v62, %v576_v42  ;;  %v628_v12 = vsel %vm373_vm1, %v588_v52, %v627_v58 }
 0x14d   : > { %v496_v16 = vperm.slane %v488_v14, %v1460_v15  ;;  %v600_v17 = vperm.slane %v592_v4, %v1472_v37  ;;  %v632_v18 = vperm.slane %v626_v11, %v1472_v37  ;;  %v636_v19 = vperm.slane %v628_v12, %v1472_v37 }
 0x14e   : > { %v637_v3 = vrot.slane %v620_v7, 4  ;;  %v647_v20 = vrot.slane %v608_v1, 4  ;;  %v651_v21 = vrot.slane %v612_v5, 4  ;;  %v497_v22 = vrot.slane %v370_v8, 4 }
 0x14f   : > { %v639_v23 = vrot.slane %v596_v63, 4  ;;  %v645_v24 = vrot.slane %v632_v18, 4  ;;  %v649_v25 = vrot.slane %v636_v19, 4  ;;  %v499_v26 = vrot.slane %v364_v13, 4 }
 0x150   : > { %v511_v14 = vrot.slane %v492_v9, 4  ;;  %v641_v27 = vrot.slane %v624_v10, 4  ;;  %v648_v28 = vsel %vm373_vm1, %v632_v18, %v647_v20  ;;  %v643_v29 = vrot.slane %v600_v17, 4 }
 0x151   : > { %v646_v30 = vsel %vm373_vm1, %v645_v24, %v608_v1  ;;  %v650_v31 = vsel %vm373_vm1, %v649_v25, %v612_v5  ;;  %v652_v32 = vsel %vm373_vm1, %v636_v19, %v651_v21  ;;  %v523_v33 = vrot.slane %v496_v16, 4 }
 0x152   : > { %v638_v34 = vsel %vm373_vm1, %v637_v3, %v596_v63  ;;  %v711_v35 = vpack.c.bf16 %v646_v30, %v646_v30  ;;  %v712_v36 = vpack.c.bf16 %v648_v28, %v648_v28  ;;  %v640_v38 = vsel %vm373_vm1, %v620_v7, %v639_v23 }
 0x153   : > { %v713_v39 = vpack.c.bf16 %v650_v31, %v650_v31  ;;  %v498_v40 = vsel %vm373_vm1, %v497_v22, %v364_v13  ;;  %v500_v41 = vsel %vm373_vm1, %v370_v8, %v499_v26  ;;  %v714_v42 = vpack.c.bf16 %v652_v32, %v652_v32 }
 0x154   : > { %v504_v43 = vperm.slane %v498_v40, %v1460_v15  ;;  %v508_v44 = vperm.slane %v500_v41, %v1460_v15  ;;  %v642_v45 = vsel %vm373_vm1, %v641_v27, %v600_v17  ;;  %v644_v46 = vsel %vm373_vm1, %v624_v10, %v643_v29  ;;  %724 = vst.msk [vmem:[%s290_s30] sm:$0xf] %vm719_vm2, %v711_v35 }
 0x155   : > { %v707_v47 = vpack.c.bf16 %v638_v34, %v638_v34  ;;  %725 = vst.msk [vmem:[%s290_s30 + $0x4] sm:$0xf] %vm719_vm2, %v712_v36  ;;  %v708_v52 = vpack.c.bf16 %v640_v38, %v640_v38  ;;  %v709_v55 = vpack.c.bf16 %v642_v45, %v642_v45  ;;  %v710_v56 = vpack.c.bf16 %v644_v46, %v644_v46 }
 0x156   : > { %v509_v48 = vrot.slane %v504_v43, 4  ;;  %v512_v49 = vsel %vm373_vm1, %v504_v43, %v511_v14  ;;  %v521_v50 = vrot.slane %v508_v44, 4  ;;  %v524_v51 = vsel %vm373_vm1, %v508_v44, %v523_v33  ;;  %726 = vst.msk [vmem:[%s290_s30 + $0x8] sm:$0xf] %vm719_vm2, %v713_v39 }
 0x157   : > { %v520_v53 = vperm.slane %v512_v49, %v1472_v37  ;;  %v532_v54 = vperm.slane %v524_v51, %v1472_v37  ;;  %727 = vst.msk [vmem:[%s290_s30 + $0xc] sm:$0xf] %vm719_vm2, %v714_v42 }
 0x158   : > { %v510_v57 = vsel %vm373_vm1, %v509_v48, %v492_v9  ;;  %v522_v58 = vsel %vm373_vm1, %v521_v50, %v496_v16 }
 0x159   : > { %v516_v59 = vperm.slane %v510_v57, %v1472_v37  ;;  %v528_v60 = vperm.slane %v522_v58, %v1472_v37  ;;  %v535_v61 = vrot.slane %v520_v53, 4  ;;  %v539_v62 = vrot.slane %v532_v54, 4 }
 0x15a   : > { %1181 = shalt.err (!%p1178_p13)
}
 0x15b   : > { %s1318_s24 = smov 4   ;;  %s1740_s29 = smov 64   ;;  %720 = vst.msk [vmem:[%s1587_s25] sm:$0xf] %vm719_vm2, %v707_v47  ;;  %v533_v63 = vrot.slane %v516_v59, 4  ;;  %v536_v0 = vsel %vm373_vm1, 0.0, %v535_v61  ;;  %v653_v4 = vsel %vm373_vm1, %v535_v61, %v516_v59  ;;  %v664_v6 = vsel %vm373_vm1, %v539_v62, %v528_v60 }
 0x15c   : > { %1001 = dma.vmem_to_hbm [thread:$0]  (%p1422_p4), %s1577_s6, 256, %s777_s7, %s1596_s17, %s1740_s29, %s1740_s29, %s1318_s24   ;;  %v537_v1 = vrot.slane %v528_v60, 4  ;;  %v540_v2 = vsel %vm373_vm1, 0.0, %v539_v62  ;;  %v658_v5 = vrot.slane %v536_v0, 4  ;;  %v657_v10 = vperm.slane %v653_v4, %v1460_v15 }
 0x15d   : > { %721 = vst.msk [vmem:[%s1587_s25 + $0x4] sm:$0xf] %vm719_vm2, %v708_v52  ;;  %v669_v7 = vrot.slane %v540_v2, 4  ;;  %v534_v8 = vsel %vm373_vm1, 0.0, %v533_v63  ;;  %v668_v11 = vperm.slane %v664_v6, %v1460_v15  ;;  %s733_s0 = scalar_lea.sflag [#allocation4], %s1444_s8  ;;  %s1196_s1 = sshra.s32 %s759_s21, 4  ;;  %s1197_s1 = int_to_ptr.hbm [resolvable:$true] %s1196_s1 }
 0x15e   : > { %722 = vst.msk [vmem:[%s1587_s25 + $0x8] sm:$0xf] %vm719_vm2, %v709_v55  ;;  %v538_v9 = vsel %vm373_vm1, 0.0, %v537_v1  ;;  %v659_v12 = vsel %vm373_vm1, %v658_v5, %v534_v8  ;;  %s1198_s10 = scalar_lea.hbm %s1197_s1, 16  ;;  %s1202_s13 = scalar_lea.hbm %s1725_s3, 32 }
 0x15f   : > { %723 = vst.msk [vmem:[%s1587_s25 + $0xc] sm:$0xf] %vm719_vm2, %v710_v56  ;;  %v670_v13 = vsel %vm373_vm1, %v669_v7, %v538_v9  ;;  %p1199_p0 = scmp.ne.s32.totalorder %s1197_s1, %s1198_s10  ;;  %p1203_p8 = scmp.lt.s32.totalorder %s1197_s1, %s1725_s3 }
 0x160   : > { %p1204_p1 = scmp.lt.s32.totalorder %s1202_s13, %s1198_s10 }
 0x161   : > { %p1200_p2 = pnand %p1199_p0, %p1422_p4 }
 0x162   : > { %p1205_p3 = por %p1204_p1, %p1203_p8 }
 0x163   : > { %p1201_p5 = pneg %p1200_p2 }
 0x165   : > { %p1206_p9 = pnand %p1205_p3, %p1201_p5 }
 0x167   : > { %1209 = shalt.err (!%p1206_p9)
}
 0x168   : > { %1000 = dma.vmem_to_hbm [thread:$0]  (%p1422_p4), %s1623_s12, 256, %s759_s21, %s733_s0, %s1740_s29, %s1740_s29, %s1318_s24   ;;  %v663_v16 = vperm.slane %v659_v12, %v1460_v15  ;;  %v674_v17 = vperm.slane %v670_v13, %v1460_v15  ;;  %v677_v18 = vrot.slane %v657_v10, 4  ;;  %v689_v19 = vrot.slane %v668_v11, 4 }
 0x169   : > { %s791_s12 = scalar_lea.hbm %s1727_s5, %s1544_s28  ;;  %s297_s26 = scalar_lea.vmem [#allocation10], %s1547_s11 }
 0x16a   : > { %v675_v3 = vrot.slane %v663_v16, 4  ;;  %v678_v20 = vsel %vm373_vm1, %v663_v16, %v677_v18  ;;  %v687_v21 = vrot.slane %v674_v17, 4  ;;  %v690_v22 = vsel %vm373_vm1, %v674_v17, %v689_v19  ;;  %s1673_s21 = sshll.u32 %s791_s12, 4  ;;  %s792_s0 = sshll.u32 %s297_s26, 4  ;;  %s793_s0 = int_to_ptr.vmem [resolvable:$true] %s792_s0  ;;  %s795_s21 = int_to_ptr.hbm [resolvable:$true] %s1673_s21 }
 0x16b   : > { %v686_v23 = vperm.slane %v678_v20, %v1472_v37  ;;  %v698_v24 = vperm.slane %v690_v22, %v1472_v37  ;;  %s1224_s28 = sshra.s32 %s795_s21, 4  ;;  %s1230_s6 = scalar_lea.hbm %s1727_s5, 32  ;;  %s1225_s28 = int_to_ptr.hbm [resolvable:$true] %s1224_s28 }
 0x16c   : > { %v676_v25 = vsel %vm373_vm1, %v675_v3, %v657_v10  ;;  %v688_v26 = vsel %vm373_vm1, %v687_v21, %v668_v11  ;;  %s1226_s11 = scalar_lea.hbm %s1225_s28, 16  ;;  %p1231_p13 = scmp.lt.s32.totalorder %s1225_s28, %s1727_s5 }
 0x16d   : > { %v682_v14 = vperm.slane %v676_v25, %v1472_v37  ;;  %v694_v15 = vperm.slane %v688_v26, %v1472_v37  ;;  %v703_v27 = vrot.slane %v698_v24, 4  ;;  %v705_v28 = vrot.slane %v686_v23, 4  ;;  %p1227_p10 = scmp.ne.s32.totalorder %s1225_s28, %s1226_s11  ;;  %p1232_p0 = scmp.lt.s32.totalorder %s1230_s6, %s1226_s11 }
 0x16f   : > { %v699_v29 = vrot.slane %v694_v15, 4  ;;  %v701_v30 = vrot.slane %v682_v14, 4  ;;  %v704_v31 = vsel %vm373_vm1, %v703_v27, %v686_v23  ;;  %v706_v32 = vsel %vm373_vm1, %v698_v24, %v705_v28  ;;  %p1228_p11 = pnand %p1227_p10, %p1422_p4  ;;  %p1233_p2 = por %p1232_p0, %p1231_p13 }
 0x170   : > { %v717_v33 = vpack.c.bf16 %v704_v31, %v704_v31  ;;  %v718_v34 = vpack.c.bf16 %v706_v32, %v706_v32 }
 0x171   : > { %v700_v37 = vsel %vm373_vm1, %v699_v29, %v682_v14  ;;  %v702_v35 = vsel %vm373_vm1, %v694_v15, %v701_v30  ;;  %p1229_p12 = pneg %p1228_p11 }
 0x172   : > { %v715_v36 = vpack.c.bf16 %v700_v37, %v700_v37  ;;  %v716_v38 = vpack.c.bf16 %v702_v35, %v702_v35  ;;  %730 = vst.msk [vmem:[%s297_s26 + $0x8] sm:$0xf] %vm719_vm2, %v717_v33 }
 0x173   : > { %731 = vst.msk [vmem:[%s297_s26 + $0xc] sm:$0xf] %vm719_vm2, %v718_v34  ;;  %p1234_p5 = pnand %p1233_p2, %p1229_p12 }
 0x174   : > { %728 = vst.msk [vmem:[%s297_s26] sm:$0xf] %vm719_vm2, %v715_v36 }
 0x175   : > { %729 = vst.msk [vmem:[%s297_s26 + $0x4] sm:$0xf] %vm719_vm2, %v716_v38 }
 0x176   : > { %1237 = shalt.err (!%p1234_p5)
}
 0x177   : > { %1002 = dma.vmem_to_hbm [thread:$0]  (%p1422_p4), %s793_s0, 256, %s795_s21, %s1596_s17, %s1740_s29, %s1740_s29, %s1318_s24  }
 0x178 PF: > { %s809_s27 = sand.u32 1, %s1280_s18   ;;  %p1015_p8 = pnand %p960_p6, %p1430_p7 }
 0x179   : > { %s810_s30 = scalar_lea.sflag [#allocation4], %s809_s27 }
 0x17a   : > { %p1016_p1 = pneg %p1015_p8 }
 0x17c   : > { %1271 = dma.done.wait (%p1016_p1), %s810_s30, 256  }
 0x17d   : > { %1273 = vsyncadd (%p1016_p1), %s810_s30, 4294967040  ;;  %s1741_s8 = sadd.s32 4294967294, %s1300_s23  }
 0x17e   : > { %s819_s14 = sand.u32 1, %s1741_s8  }
 0x17f   : > { %s820_s25 = scalar_lea.sflag [#allocation9], %s819_s14 }
 0x180   : > { %1275 = dma.done.wait (%p1016_p1), %s820_s25, 512  }
 0x181   : > { %1277 = vsyncadd (%p1016_p1), %s820_s25, 4294966784  ;;  %s26_s23 = sadd.s32 1, %s1300_s23   ;;  %s1742_s18 = smov %s1284_s19 }
 0x182   : > { %p23_p4 = scmp.ge.s32.totalorder %s26_s23, 4   ;;  %s1743_s19 = smov %s1288_s20 }
 0x183   : > { %s1744_s20 = smov %s1428_s15  ;;  %s1745_s21 = smov %s1296_s22 }
 0x184   : > { %s1746_s22 = smov %s1748_s9  ;;  %25 = sbr.rel (!%p23_p4) target bundleno = 12 (0xc), region = 113 }
 0x189   :  { %836 = vsyncpa [#allocation3], 1 }
 0x18a   :  { %838 = vsyncpa [#allocation3 + $0x1], 1 }
 0x18b   :  { %839 = vsyncpa [#allocation6], 1 }
 0x18c   :  { %840 = vsyncpa [#allocation4], 1 }
 0x18d   :  { %842 = vsyncpa [#allocation4 + $0x1], 1 }
 0x18e   :  { %843 = vsyncpa [#allocation9], 1 }
 0x18f   :  { %845 = vsyncpa [#allocation9 + $0x1], 1 }

</bundles_post_ra>
